<compile_context>
chip_gen: v7x
topology: tpu7x:2x2x1
jax: 0.10.0
libtpu: 0.0.40
codegen_flags: <defaults>
</compile_context>

<pallas_src>
import numpy as np
import jax
import jax.numpy as jnp
from jax import lax
from jax.experimental import pallas as pl
from jax.experimental.pallas import tpu as pltpu

EPS = 1e-5        # nn.BatchNorm2d default eps
LANES = 128
SUBLANES_BF16 = 16


# ---------------- fused Pallas kernel ----------------

def _make_fused_kernel(N, OHW, OHW_p, M_total):
    """conv matmul + training-mode BN (batch mean, biased var) + ReLU, fused."""
    inv_m = 1.0 / float(M_total)

    def kernel(p_ref, w_ref, gamma_ref, beta_ref, o_ref):
        # p_ref: (K, N*OHW_p) bf16 ; w_ref: (Cp, K) bf16
        # gamma_ref / beta_ref: (Cp, 1) f32 ; o_ref: (N, Cp, OHW_p) f32
        y = jnp.dot(w_ref[...], p_ref[...],
                    preferred_element_type=jnp.float32)        # (Cp, N*OHW_p)

        if OHW_p != OHW:
            col = lax.broadcasted_iota(jnp.int32, y.shape, 1)
            valid = (col % OHW_p) < OHW
            y_stats = jnp.where(valid, y, 0.0)
        else:
            valid = None
            y_stats = y

        # batch mean / biased variance per channel (centered, on resident slab)
        mean = jnp.sum(y_stats, axis=1, keepdims=True) * inv_m        # (Cp, 1)
        c = y - mean
        c_stats = jnp.where(valid, c, 0.0) if valid is not None else c
        var = jnp.sum(c_stats * c_stats, axis=1, keepdims=True) * inv_m

        scale = gamma_ref[...] * lax.rsqrt(var + EPS)                 # (Cp, 1)
        z = jnp.maximum(c * scale + beta_ref[...], 0.0)               # (Cp, N*OHW_p)

        # write each batch's (Cp, OHW_p) slab; static, lane-aligned slices
        for n in range(N):
            o_ref[n] = z[:, n * OHW_p:(n + 1) * OHW_p]

    return kernel


# ---------------- wrapper ----------------

def deconv_block_forward(x, weight, gamma, beta, *, stride, padding, out_padding=0):
    """x: (N, C_in, H, W) NCHW; weight: (C_in, C_out, kH, kW) (PyTorch ConvTranspose2d)."""
    x = x.astype(jnp.float32)
    N, Cin, H, W = x.shape
    _, Cout, kH, kW = weight.shape
    s, p, op = stride, padding, out_padding
    OH = (H - 1) * s - 2 * p + kH + op
    OW = (W - 1) * s - 2 * p + kW + op
    OHW = OH * OW
    M = N * OHW
    K = Cin * kH * kW
    # channels padded to a multiple of 16 sublanes (bf16-tile-aligned matmul LHS)
    Cp = ((Cout + SUBLANES_BF16 - 1) // SUBLANES_BF16) * SUBLANES_BF16
    # per-batch spatial axis padded to 128 lanes
    OHW_p = ((OHW + LANES - 1) // LANES) * LANES
    Mp = N * OHW_p

    # --- glue: transposed conv == stride-1 conv over zero-dilated, padded input ---
    Hd = (H - 1) * s + 1
    Wd = (W - 1) * s + 1
    xd = jnp.zeros((N, Cin, Hd, Wd), jnp.float32).at[:, :, ::s, ::s].set(x)
    ph, pw = kH - 1 - p, kW - 1 - p
    xd = jnp.pad(xd, ((0, 0), (0, 0), (ph, ph + op), (pw, pw + op)))

    # weights -> (Cp, K) A matrix, K ordered (ci, kh, kw); bf16 for the MXU
    w_flip = jnp.flip(weight.astype(jnp.float32), axis=(2, 3))       # (Cin,Cout,kH,kW)
    w_mat = jnp.transpose(w_flip, (1, 0, 2, 3)).reshape(Cout, K)     # (Cout, K)
    w_mat = jnp.pad(w_mat, ((0, Cp - Cout), (0, 0))).astype(jnp.bfloat16)

    # im2col patches -> (K, N*OHW_p) B matrix (spatial on lanes), K ordered (ci, kh, kw)
    # TODO(synk): at production sizes, build this patch tile inside the kernel from
    # kH*kW shifted slices of the channels-last dilated input instead of
    # materializing the kH*kW-duplicated array in HBM; negligible at this toy size.
    taps = jnp.stack([xd[:, :, kh:kh + OH, kw:kw + OW]
                      for kh in range(kH) for kw in range(kW)], axis=2)  # (N,Cin,kHkW,OH,OW)
    patches = taps.reshape(N, K, OHW)
    patches = jnp.transpose(patches, (1, 0, 2))                          # (K, N, OHW)
    if OHW_p != OHW:
        patches = jnp.pad(patches, ((0, 0), (0, 0), (0, OHW_p - OHW)))
    patches = patches.reshape(K, Mp).astype(jnp.bfloat16)

    gamma_p = jnp.pad(gamma.astype(jnp.float32), (0, Cp - Cout)).reshape(Cp, 1)
    beta_p = jnp.pad(beta.astype(jnp.float32), (0, Cp - Cout)).reshape(Cp, 1)

    kernel = _make_fused_kernel(N, OHW, OHW_p, M)

    out = pl.pallas_call(
        kernel,
        out_shape=jax.ShapeDtypeStruct((N, Cp, OHW_p), jnp.float32),
        grid_spec=pltpu.PrefetchScalarGridSpec(
            num_scalar_prefetch=0,
            grid=(1,),  # whole problem fits VMEM -> single step, fully fused
            in_specs=[
                pl.BlockSpec((K, Mp), lambda i: (0, 0)),
                pl.BlockSpec((Cp, K), lambda i: (0, 0)),
                pl.BlockSpec((Cp, 1), lambda i: (0, 0)),
                pl.BlockSpec((Cp, 1), lambda i: (0, 0)),
            ],
            out_specs=pl.BlockSpec((N, Cp, OHW_p), lambda i: (0, 0, 0)),
        ),
        compiler_params=pltpu.CompilerParams(
            dimension_semantics=("arbitrary",),
            vmem_limit_bytes=32 * 1024 * 1024,  # far above footprint; <= physical on v5e/v6e/v7x
        ),
    )(patches, w_mat, gamma_p, beta_p)

    # padded channels / padded spatial are structurally zero; slice + free reshape
    out = out[:, :Cout, :OHW].reshape(N, Cout, OH, OW)
    return out


# ---------------- pure-numpy reference (PyTorch semantics) ----------------

def _reference(x, weight, gamma, beta, stride, padding, out_padding=0):
    x = np.asarray(x, np.float32)
    w = np.asarray(weight, np.float32)
    N, Cin, H, W = x.shape
    _, Cout, kH, kW = w.shape
    OH = (H - 1) * stride - 2 * padding + kH + out_padding
    OW = (W - 1) * stride - 2 * padding + kW + out_padding
    buf = np.zeros((N, Cout, (H - 1) * stride + kH + out_padding,
                    (W - 1) * stride + kW + out_padding), np.float32)
    for ih in range(H):
        for iw in range(W):
            buf[:, :, ih * stride:ih * stride + kH, iw * stride:iw * stride + kW] += \
                np.einsum('nc,cokl->nokl', x[:, :, ih, iw], w)
    conv = buf[:, :, padding:padding + OH, padding:padding + OW]
    mean = conv.mean(axis=(0, 2, 3), keepdims=True)
    var = conv.var(axis=(0, 2, 3), keepdims=True)          # biased (training-mode BN)
    g = np.asarray(gamma, np.float32).reshape(1, -1, 1, 1)
    b = np.asarray(beta, np.float32).reshape(1, -1, 1, 1)
    y = (conv - mean) / np.sqrt(var + EPS) * g + b
    return np.maximum(y, 0.0)


# ---------------- main ----------------

if __name__ == "__main__":
    # Module config: DeConvBlock(in_dim=4, out_dim=8, kernel_size=4, stride=2, padding=1)
    N, Cin, H, W = 2, 4, 16, 16
    Cout, k, stride, padding = 8, 4, 2, 1

    key = jax.random.PRNGKey(0)
    kx, kw, kg, kb = jax.random.split(key, 4)
    x = jax.random.normal(kx, (N, Cin, H, W), jnp.float32)
    weight = jax.random.normal(kw, (Cin, Cout, k, k), jnp.float32) * 0.1
    gamma = 1.0 + 0.1 * jax.random.normal(kg, (Cout,), jnp.float32)
    beta = 0.1 * jax.random.normal(kb, (Cout,), jnp.float32)

    out = deconv_block_forward(x, weight, gamma, beta,
                               stride=stride, padding=padding, out_padding=0)
    out = jax.block_until_ready(out)

    ref = _reference(x, weight, gamma, beta, stride, padding)
    assert out.shape == ref.shape, (out.shape, ref.shape)
    # tolerance accounts for bf16 MXU inputs (f32 accumulation / centered stats / BN math)
    np.testing.assert_allclose(np.asarray(out), ref, rtol=3e-2, atol=3e-2)
    print("KERNEL_OK")
</pallas_src>

<mosaic_0001>
module attributes {stable_mosaic.version = 11 : i64} {
  func.func @kernel(%arg0: i32, %arg1: memref<64x2048xbf16, #tpu.memory_space<vmem>>, %arg2: memref<16x64xbf16, #tpu.memory_space<vmem>>, %arg3: memref<16x1xf32, #tpu.memory_space<vmem>>, %arg4: memref<16x1xf32, #tpu.memory_space<vmem>>, %arg5: memref<2x16x1024xf32, #tpu.memory_space<vmem>>) attributes {dimension_semantics = [#tpu.dimension_semantics<arbitrary>], iteration_bounds = array<i64: 1>, scalar_prefetch = 0 : i64, scratch_operands = 0 : i64, tpu.core_type = #tpu.core_type<tc>, window_params = [{pipeline_mode = #tpu.pipeline_mode<synchronous>, transform_indices = @transform_0, window_bounds = array<i64: 64, 2048>}, {pipeline_mode = #tpu.pipeline_mode<synchronous>, transform_indices = @transform_1, window_bounds = array<i64: 16, 64>}, {pipeline_mode = #tpu.pipeline_mode<synchronous>, transform_indices = @transform_2, window_bounds = array<i64: 16, 1>}, {pipeline_mode = #tpu.pipeline_mode<synchronous>, transform_indices = @transform_3, window_bounds = array<i64: 16, 1>}, {pipeline_mode = #tpu.pipeline_mode<synchronous>, transform_indices = @transform_4, window_bounds = array<i64: 2, 16, 1024>}]} {
    %c0 = arith.constant 0 : index
    %c0_0 = arith.constant 0 : index
    %0 = vector.load %arg2[%c0, %c0_0] : memref<16x64xbf16, #tpu.memory_space<vmem>>, vector<16x64xbf16>
    %c0_1 = arith.constant 0 : index
    %c0_2 = arith.constant 0 : index
    %1 = vector.load %arg1[%c0_1, %c0_2] : memref<64x2048xbf16, #tpu.memory_space<vmem>>, vector<64x2048xbf16>
    %cst = arith.constant dense<0.000000e+00> : vector<16x2048xf32>
    %2 = tpu.matmul %0, %1, %cst {dimension_numbers = #tpu.dot_dimension_numbers<[1], [0], [0], [1], [0, 0, 1, 1], [], []>} : vector<16x64xbf16>, vector<64x2048xbf16>, vector<16x2048xf32> -> vector<16x2048xf32>
    %cst_3 = arith.constant dense<0.000000e+00> : vector<16xf32>
    %3 = vector.multi_reduction <add>, %2, %cst_3 [1] : vector<16x2048xf32> to vector<16xf32>
    %4 = vector.shape_cast %3 : vector<16xf32> to vector<16x1xf32>
    %cst_4 = arith.constant 4.8828125E-4 : f32
    %5 = vector.broadcast %cst_4 : f32 to vector<16x1xf32>
    %6 = arith.mulf %4, %5 : vector<16x1xf32>
    %7 = vector.broadcast %6 : vector<16x1xf32> to vector<16x2048xf32>
    %8 = arith.subf %2, %7 : vector<16x2048xf32>
    %9 = arith.mulf %8, %8 : vector<16x2048xf32>
    %cst_5 = arith.constant dense<0.000000e+00> : vector<16xf32>
    %10 = vector.multi_reduction <add>, %9, %cst_5 [1] : vector<16x2048xf32> to vector<16xf32>
    %11 = vector.shape_cast %10 : vector<16xf32> to vector<16x1xf32>
    %cst_6 = arith.constant 4.8828125E-4 : f32
    %12 = vector.broadcast %cst_6 : f32 to vector<16x1xf32>
    %13 = arith.mulf %11, %12 : vector<16x1xf32>
    %c0_7 = arith.constant 0 : index
    %c0_8 = arith.constant 0 : index
    %14 = vector.load %arg3[%c0_7, %c0_8] : memref<16x1xf32, #tpu.memory_space<vmem>>, vector<16x1xf32>
    %cst_9 = arith.constant 9.99999974E-6 : f32
    %15 = vector.broadcast %cst_9 : f32 to vector<16x1xf32>
    %16 = arith.addf %13, %15 : vector<16x1xf32>
    %17 = math.rsqrt %16 : vector<16x1xf32>
    %18 = arith.mulf %14, %17 : vector<16x1xf32>
    %19 = vector.broadcast %18 : vector<16x1xf32> to vector<16x2048xf32>
    %20 = arith.mulf %8, %19 : vector<16x2048xf32>
    %c0_10 = arith.constant 0 : index
    %c0_11 = arith.constant 0 : index
    %21 = vector.load %arg4[%c0_10, %c0_11] : memref<16x1xf32, #tpu.memory_space<vmem>>, vector<16x1xf32>
    %22 = vector.broadcast %21 : vector<16x1xf32> to vector<16x2048xf32>
    %23 = arith.addf %20, %22 : vector<16x2048xf32>
    %cst_12 = arith.constant 0.000000e+00 : f32
    %24 = vector.broadcast %cst_12 : f32 to vector<16x2048xf32>
    %25 = arith.maximumf %23, %24 : vector<16x2048xf32>
    %26 = vector.extract_strided_slice %25 {offsets = [0, 0], sizes = [16, 1024], strides = [1, 1]} : vector<16x2048xf32> to vector<16x1024xf32>
    %c0_13 = arith.constant 0 : index
    %c0_14 = arith.constant 0 : index
    %c0_15 = arith.constant 0 : index
    %27 = vector.load %arg5[%c0_13, %c0_14, %c0_15] : memref<2x16x1024xf32, #tpu.memory_space<vmem>>, vector<1x16x1024xf32>
    %28 = vector.shape_cast %27 : vector<1x16x1024xf32> to vector<16x1024xf32>
    %29 = vector.shape_cast %26 : vector<16x1024xf32> to vector<1x16x1024xf32>
    tpu.vector_store %arg5[%c0_13, %c0_14, %c0_15], %29 {strides = array<i32>} : memref<2x16x1024xf32, #tpu.memory_space<vmem>>, vector<1x16x1024xf32>,
    %30 = vector.extract_strided_slice %25 {offsets = [0, 1024], sizes = [16, 1024], strides = [1, 1]} : vector<16x2048xf32> to vector<16x1024xf32>
    %c1 = arith.constant 1 : index
    %c0_16 = arith.constant 0 : index
    %c0_17 = arith.constant 0 : index
    %31 = vector.load %arg5[%c1, %c0_16, %c0_17] : memref<2x16x1024xf32, #tpu.memory_space<vmem>>, vector<1x16x1024xf32>
    %32 = vector.shape_cast %31 : vector<1x16x1024xf32> to vector<16x1024xf32>
    %33 = vector.shape_cast %30 : vector<16x1024xf32> to vector<1x16x1024xf32>
    tpu.vector_store %arg5[%c1, %c0_16, %c0_17], %33 {strides = array<i32>} : memref<2x16x1024xf32, #tpu.memory_space<vmem>>, vector<1x16x1024xf32>,
    return
  }
  func.func @transform_0(%arg0: i32) -> (i32, i32) {
    %c0_i32 = arith.constant 0 : i32
    %c0_i32_0 = arith.constant 0 : i32
    %c0_i32_1 = arith.constant 0 : i32
    return %c0_i32, %c0_i32_0 : i32, i32
  }
  func.func @transform_1(%arg0: i32) -> (i32, i32) {
    %c0_i32 = arith.constant 0 : i32
    %c0_i32_0 = arith.constant 0 : i32
    %c0_i32_1 = arith.constant 0 : i32
    return %c0_i32, %c0_i32_0 : i32, i32
  }
  func.func @transform_2(%arg0: i32) -> (i32, i32) {
    %c0_i32 = arith.constant 0 : i32
    %c0_i32_0 = arith.constant 0 : i32
    %c0_i32_1 = arith.constant 0 : i32
    return %c0_i32, %c0_i32_0 : i32, i32
  }
  func.func @transform_3(%arg0: i32) -> (i32, i32) {
    %c0_i32 = arith.constant 0 : i32
    %c0_i32_0 = arith.constant 0 : i32
    %c0_i32_1 = arith.constant 0 : i32
    return %c0_i32, %c0_i32_0 : i32, i32
  }
  func.func @transform_4(%arg0: i32) -> (i32, i32, i32) {
    %c0_i32 = arith.constant 0 : i32
    %c0_i32_0 = arith.constant 0 : i32
    %c0_i32_1 = arith.constant 0 : i32
    %c0_i32_2 = arith.constant 0 : i32
    return %c0_i32, %c0_i32_0, %c0_i32_1 : i32, i32, i32
  }
}

</mosaic_0001>

<bundles_post_ra>
// kernel: tpu_custom_call.1
= control target key start
LH: loop header
LB: loop body
LE: loop exit
PB: predicated region body
PF: predicated region fallthrough
CT: control target
= control target key end

     0   :  { %9 = vsyncpa [#allocation3], 0  ;;  %s1636_s0 = inlined_call_operand.hbm [shape: bf16[64,2048], index: 0, kind: input, shape index: {}]   ;;  %s1637_s1 = inlined_call_operand.vmem [shape: bf16[16,64], index: 1, kind: input, shape index: {}]   ;;  %s1638_s2 = inlined_call_operand.vmem [shape: f32[16,1], index: 2, kind: input, shape index: {}]   ;;  %s1639_s3 = inlined_call_operand.vmem [shape: f32[16,1], index: 3, kind: input, shape index: {}]   ;;  %s1640_s4 = inlined_call_operand.hbm [shape: f32[2,16,1024], index: 4, kind: output, shape index: {}]  }
   0x1   :  { %10 = vsyncpa [#allocation4], 0  ;;  %s1217_s15 = smov [#allocation2]   ;;  %s1169_s19 = scalar_lea.hbm %s1636_s0, 8192 }
   0x2   :  { %s16_s16 = sshll.u32 %s1217_s15, 4  ;;  %p1170_p0 = scmp.ne.s32.totalorder %s1636_s0, %s1169_s19  ;;  %s17_s16 = int_to_ptr.vmem [resolvable:$true] %s16_s16 }
   0x3   :  { %p1173_p1 = scmp.lt.u32.totalorder %s1169_s19, %s1636_s0 }
   0x5   :  { %p1175_p2 = pnand %p1173_p1, %p1170_p0 }
   0x7   :  { %1178 = shalt.err (!%p1175_p2)
}
   0x8   :  { %s1179_s24 = scalar_lea.vmem %s17_s16, 8192  ;;  %p1184_p4 = scmp.lt.s32.totalorder %s17_s16, %s17_s16 }
   0x9   :  { %p1180_p3 = scmp.ne.s32.totalorder %s17_s16, %s1179_s24  ;;  %p1185_p5 = scmp.lt.s32.totalorder %s1179_s24, %s1179_s24 }
   0xb   :  { %p1186_p6 = por %p1185_p5, %p1184_p4 }
   0xd   :  { %p1187_p7 = pnand %p1186_p6, %p1180_p3 }
   0xf   :  { %1190 = shalt.err (!%p1187_p7)
}
  0x10   :  { %s1218_s25 = smov 1024   ;;  %s1219_s26 = smov 64  }
  0x11   :  { %22 = dma.hbm_to_vmem [thread:$0]  %s1636_s0, 8192, %s17_s16, [#allocation3], %s1218_s25, %s1218_s25, %s1219_s26  }
  0x12   :  { %1213 = dma.done.wait [#allocation3], 8192  }
  0x13   :  { %1214 = vsyncadd [#allocation3], 4294959104  ;;  %v1220_v0 = vmov 0   ;;  %v35_v1 = vld [vmem:[#allocation2] sm:$0xff]  ;;  %v36_v3 = vld [vmem:[#allocation2 + $0x8] sm:$0xff]  ;;  %vm424_vm0 = vcmask 523264  }
  0x14   :  { %460 = vmatprep.mubr.bf16.mxu0 %v1220_v0  ;;  %503 = vmatprep.mubr.bf16.mxu1 %v1220_v0  ;;  %v43_v2 = vld [vmem:[#allocation2 + $0x40] sm:$0xff]  ;;  %v44_v6 = vld [vmem:[#allocation2 + $0x48] sm:$0xff]  ;;  %v37_v31 = vld [vmem:[#allocation2 + $0x10] sm:$0xff] }
  0x15   :  { %1163 = vset.pattern.permute.xlu1 %v1220_v0  ;;  %1162 = vset.pattern.permute.xlu0 %v1220_v0  ;;  %v1086_v4 = vcombine.high %v35_v1, %v43_v2  ;;  %v1085_v5 = vcombine.low %v35_v1, %v43_v2  ;;  %v51_v7 = vld [vmem:[#allocation2 + $0x80] sm:$0xff]  ;;  %v1088_v9 = vcombine.high %v36_v3, %v44_v6  ;;  %v52_v12 = vld [vmem:[#allocation2 + $0x88] sm:$0xff]  ;;  %v45_v32 = vld [vmem:[#allocation2 + $0x50] sm:$0xff] }
  0x16   :  { %v59_v8 = vld [vmem:[#allocation2 + $0xc0] sm:$0xff]  ;;  %v1087_v10 = vcombine.low %v36_v3, %v44_v6  ;;  %v60_v13 = vld [vmem:[#allocation2 + $0xc8] sm:$0xff]  ;;  %v38_v33 = vld [vmem:[#allocation2 + $0x18] sm:$0xff]  ;;  %v1090_v37 = vcombine.high %v37_v31, %v45_v32  ;;  %v1089_v44 = vcombine.low %v37_v31, %v45_v32 }
  0x17   :  { %v1102_v11 = vcombine.high %v51_v7, %v59_v8  ;;  %v67_v14 = vld [vmem:[#allocation2 + $0x100] sm:$0xff]  ;;  %428 = vmatprep.subr.bf16.mxu0 %v1086_v4  ;;  %v1104_v15 = vcombine.high %v52_v12, %v60_v13  ;;  %v68_v17 = vld [vmem:[#allocation2 + $0x108] sm:$0xff]  ;;  %471 = vmatprep.subr.bf16.mxu1 %v1088_v9  ;;  %v1101_v19 = vcombine.low %v51_v7, %v59_v8  ;;  %v46_v34 = vld [vmem:[#allocation2 + $0x58] sm:$0xff] }
  0x18   :  { %v75_v16 = vld [vmem:[#allocation2 + $0x140] sm:$0xff]  ;;  %v76_v18 = vld [vmem:[#allocation2 + $0x148] sm:$0xff]  ;;  %429 = vmatpush1.bf16.msra.mxu0 %v1085_v5  ;;  %472 = vmatpush1.bf16.msra.mxu1 %v1087_v10  ;;  %v1103_v20 = vcombine.low %v52_v12, %v60_v13  ;;  %v1092_v38 = vcombine.high %v38_v33, %v46_v34  ;;  %v53_v39 = vld [vmem:[#allocation2 + $0x90] sm:$0xff]  ;;  %v1091_v45 = vcombine.low %v38_v33, %v46_v34 }
  0x19   :  { %430 = vmatprep.subr.bf16.mxu0 %v1102_v11  ;;  %v1118_v21 = vcombine.high %v67_v14, %v75_v16  ;;  %473 = vmatprep.subr.bf16.mxu1 %v1104_v15  ;;  %v1120_v22 = vcombine.high %v68_v17, %v76_v18  ;;  %v83_v23 = vld [vmem:[#allocation2 + $0x180] sm:$0xff]  ;;  %v84_v25 = vld [vmem:[#allocation2 + $0x188] sm:$0xff]  ;;  %v1117_v27 = vcombine.low %v67_v14, %v75_v16  ;;  %v61_v40 = vld [vmem:[#allocation2 + $0xd0] sm:$0xff] }
  0x1a   :  { %v91_v24 = vld [vmem:[#allocation2 + $0x1c0] sm:$0xff]  ;;  %v92_v26 = vld [vmem:[#allocation2 + $0x1c8] sm:$0xff]  ;;  %v1119_v28 = vcombine.low %v68_v17, %v76_v18  ;;  %v54_v42 = vld [vmem:[#allocation2 + $0x98] sm:$0xff]  ;;  %v1106_v46 = vcombine.high %v53_v39, %v61_v40  ;;  %v1105_v52 = vcombine.low %v53_v39, %v61_v40 }
  0x1b   :  { %v1134_v29 = vcombine.high %v83_v23, %v91_v24  ;;  %v1136_v30 = vcombine.high %v84_v25, %v92_v26  ;;  %v1133_v35 = vcombine.low %v83_v23, %v91_v24  ;;  %v1135_v36 = vcombine.low %v84_v25, %v92_v26  ;;  %v1269_v41 = vld [vmem:[%s1637_s1] sm:$0xff]   ;;  %v62_v43 = vld [vmem:[#allocation2 + $0xd8] sm:$0xff]  ;;  %v69_v48 = vld [vmem:[#allocation2 + $0x110] sm:$0xff] }
  0x1c   :  { %431 = vmatpush1.bf16.msra.mxu0 %v1101_v19  ;;  %474 = vmatpush1.bf16.msra.mxu1 %v1103_v20  ;;  %v1108_v47 = vcombine.high %v54_v42, %v62_v43  ;;  %v77_v49 = vld [vmem:[#allocation2 + $0x150] sm:$0xff]  ;;  %v70_v50 = vld [vmem:[#allocation2 + $0x118] sm:$0xff]  ;;  %v1107_v53 = vcombine.low %v54_v42, %v62_v43  ;;  %v39_v1 = vld [vmem:[#allocation2 + $0x20] sm:$0xff] }
  0x1d   :  { %432 = vmatprep.subr.bf16.mxu0 %v1118_v21  ;;  %475 = vmatprep.subr.bf16.mxu1 %v1120_v22  ;;  %v78_v51 = vld [vmem:[#allocation2 + $0x158] sm:$0xff]  ;;  %v1122_v54 = vcombine.high %v69_v48, %v77_v49  ;;  %v85_v56 = vld [vmem:[#allocation2 + $0x190] sm:$0xff]  ;;  %v1121_v60 = vcombine.low %v69_v48, %v77_v49  ;;  %v47_v2 = vld [vmem:[#allocation2 + $0x60] sm:$0xff] }
  0x1e   :  { %v1124_v55 = vcombine.high %v70_v50, %v78_v51  ;;  %v93_v57 = vld [vmem:[#allocation2 + $0x1d0] sm:$0xff]  ;;  %v86_v58 = vld [vmem:[#allocation2 + $0x198] sm:$0xff]  ;;  %v1123_v61 = vcombine.low %v70_v50, %v78_v51  ;;  %v40_v3 = vld [vmem:[#allocation2 + $0x28] sm:$0xff]  ;;  %v1094_v7 = vcombine.high %v39_v1, %v47_v2  ;;  %v1093_v13 = vcombine.low %v39_v1, %v47_v2 }
  0x1f   :  { %v94_v59 = vld [vmem:[#allocation2 + $0x1d8] sm:$0xff]  ;;  %v1138_v62 = vcombine.high %v85_v56, %v93_v57  ;;  %v48_v4 = vld [vmem:[#allocation2 + $0x68] sm:$0xff]  ;;  %v1137_v5 = vcombine.low %v85_v56, %v93_v57  ;;  %v55_v9 = vld [vmem:[#allocation2 + $0xa0] sm:$0xff] }
  0x20   :  { %433 = vmatpush1.bf16.msra.mxu0 %v1117_v27  ;;  %476 = vmatpush1.bf16.msra.mxu1 %v1119_v28  ;;  %v1140_v63 = vcombine.high %v86_v58, %v94_v59  ;;  %v1139_v6 = vcombine.low %v86_v58, %v94_v59  ;;  %v1096_v8 = vcombine.high %v40_v3, %v48_v4  ;;  %v63_v10 = vld [vmem:[#allocation2 + $0xe0] sm:$0xff]  ;;  %v56_v11 = vld [vmem:[#allocation2 + $0xa8] sm:$0xff]  ;;  %v41_v33 = vld [vmem:[#allocation2 + $0x30] sm:$0xff] }
  0x21   :  { %434 = vmatprep.subr.bf16.mxu0 %v1134_v29  ;;  %477 = vmatprep.subr.bf16.mxu1 %v1136_v30  ;;  %v64_v12 = vld [vmem:[#allocation2 + $0xe8] sm:$0xff]  ;;  %v1095_v14 = vcombine.low %v40_v3, %v48_v4  ;;  %v1110_v15 = vcombine.high %v55_v9, %v63_v10  ;;  %v71_v17 = vld [vmem:[#allocation2 + $0x120] sm:$0xff]  ;;  %v1109_v21 = vcombine.low %v55_v9, %v63_v10  ;;  %v49_v34 = vld [vmem:[#allocation2 + $0x70] sm:$0xff] }
  0x22   :  { %v1112_v16 = vcombine.high %v56_v11, %v64_v12  ;;  %v79_v18 = vld [vmem:[#allocation2 + $0x160] sm:$0xff]  ;;  %v72_v19 = vld [vmem:[#allocation2 + $0x128] sm:$0xff]  ;;  %v1111_v22 = vcombine.low %v56_v11, %v64_v12  ;;  %v1098_v39 = vcombine.high %v41_v33, %v49_v34  ;;  %v57_v42 = vld [vmem:[#allocation2 + $0xb0] sm:$0xff] }
  0x23   :  { %v80_v20 = vld [vmem:[#allocation2 + $0x168] sm:$0xff]  ;;  %v1126_v23 = vcombine.high %v71_v17, %v79_v18  ;;  %v87_v25 = vld [vmem:[#allocation2 + $0x1a0] sm:$0xff]  ;;  %v1125_v29 = vcombine.low %v71_v17, %v79_v18  ;;  %v65_v43 = vld [vmem:[#allocation2 + $0xf0] sm:$0xff] }
  0x24   :  { %435 = vmatpush1.bf16.msra.mxu0 %v1133_v35  ;;  %478 = vmatpush1.bf16.msra.mxu1 %v1135_v36  ;;  %v1128_v24 = vcombine.high %v72_v19, %v80_v20  ;;  %v95_v26 = vld [vmem:[#allocation2 + $0x1e0] sm:$0xff]  ;;  %v88_v27 = vld [vmem:[#allocation2 + $0x1a8] sm:$0xff]  ;;  %v1127_v30 = vcombine.low %v72_v19, %v80_v20  ;;  %v42_v35 = vld [vmem:[#allocation2 + $0x38] sm:$0xff]  ;;  %v1114_v48 = vcombine.high %v57_v42, %v65_v43 }
  0x25   :  { %514 = vmatprep.subr.bf16.mxu0 %v1090_v37  ;;  %557 = vmatprep.subr.bf16.mxu1 %v1092_v38  ;;  %v96_v28 = vld [vmem:[#allocation2 + $0x1e8] sm:$0xff]  ;;  %v1142_v31 = vcombine.high %v87_v25, %v95_v26  ;;  %v50_v36 = vld [vmem:[#allocation2 + $0x78] sm:$0xff]  ;;  %v1141_v37 = vcombine.low %v87_v25, %v95_v26  ;;  %v73_v50 = vld [vmem:[#allocation2 + $0x130] sm:$0xff] }
  0x26   :  { %v1144_v32 = vcombine.high %v88_v27, %v96_v28  ;;  %v1143_v38 = vcombine.low %v88_v27, %v96_v28  ;;  %v1100_v40 = vcombine.high %v42_v35, %v50_v36  ;;  %v81_v51 = vld [vmem:[#allocation2 + $0x170] sm:$0xff] }
  0x27   :  { %1149 = vmatmul.mubr.msk.bf16.vlgmr.msra.gmra.mrb[0].mxu0 %vm424_vm0, %v1269_v41  ;;  %1150 = vmatmul.mubr.msk.bf16.vlgmr.msra.gmra.mrb[0].mxu1 %vm424_vm0, %v1269_v41  ;;  %v1130_v56 = vcombine.high %v73_v50, %v81_v51  ;;  %v89_v58 = vld [vmem:[#allocation2 + $0x1b0] sm:$0xff] }
  0x28   :  { %515 = vmatpush1.bf16.msra.mxu0 %v1089_v44  ;;  %558 = vmatpush1.bf16.msra.mxu1 %v1091_v45  ;;  %v58_v44 = vld [vmem:[#allocation2 + $0xb8] sm:$0xff]  ;;  %v97_v59 = vld [vmem:[#allocation2 + $0x1f0] sm:$0xff] }
  0x29   :  { %516 = vmatprep.subr.bf16.mxu0 %v1106_v46  ;;  %559 = vmatprep.subr.bf16.mxu1 %v1108_v47  ;;  %v66_v45 = vld [vmem:[#allocation2 + $0xf8] sm:$0xff]  ;;  %v1097_v46 = vcombine.low %v41_v33, %v49_v34  ;;  %v1099_v47 = vcombine.low %v42_v35, %v50_v36  ;;  %v1146_v1 = vcombine.high %v89_v58, %v97_v59 }
  0x2a   :  { %546 = vmatprep.mubr.bf16.mxu0 %v1220_v0  ;;  %589 = vmatprep.mubr.bf16.mxu1 %v1220_v0  ;;  %v1116_v49 = vcombine.high %v58_v44, %v66_v45  ;;  %v1145_v3 = vcombine.low %v89_v58, %v97_v59 }
  0x2c   :  { %517 = vmatpush1.bf16.msra.mxu0 %v1105_v52  ;;  %560 = vmatpush1.bf16.msra.mxu1 %v1107_v53  ;;  %v74_v52 = vld [vmem:[#allocation2 + $0x138] sm:$0xff] }
  0x2d   :  { %518 = vmatprep.subr.bf16.mxu0 %v1122_v54  ;;  %561 = vmatprep.subr.bf16.mxu1 %v1124_v55  ;;  %v82_v53 = vld [vmem:[#allocation2 + $0x178] sm:$0xff]  ;;  %v1113_v54 = vcombine.low %v57_v42, %v65_v43  ;;  %v1115_v55 = vcombine.low %v58_v44, %v66_v45 }
  0x2e   :  { %v1132_v57 = vcombine.high %v74_v52, %v82_v53 }
  0x30   :  { %519 = vmatpush1.bf16.msra.mxu0 %v1121_v60  ;;  %562 = vmatpush1.bf16.msra.mxu1 %v1123_v61  ;;  %v90_v60 = vld [vmem:[#allocation2 + $0x1b8] sm:$0xff] }
  0x31   :  { %520 = vmatprep.subr.bf16.mxu0 %v1138_v62  ;;  %563 = vmatprep.subr.bf16.mxu1 %v1140_v63  ;;  %v98_v61 = vld [vmem:[#allocation2 + $0x1f8] sm:$0xff]  ;;  %v1129_v62 = vcombine.low %v73_v50, %v81_v51  ;;  %v1131_v63 = vcombine.low %v74_v52, %v82_v53 }
  0x32   :  { %v1148_v2 = vcombine.high %v90_v60, %v98_v61  ;;  %v1147_v4 = vcombine.low %v90_v60, %v98_v61 }
  0x34   :  { %521 = vmatpush1.bf16.msra.mxu0 %v1137_v5  ;;  %564 = vmatpush1.bf16.msra.mxu1 %v1139_v6 }
  0x35   :  { %600 = vmatprep.subr.bf16.mxu0 %v1094_v7  ;;  %643 = vmatprep.subr.bf16.mxu1 %v1096_v8 }
  0x37   :  { %1151 = vmatmul.mubr.msk.bf16.vlgmr.msra.gmra.mrb[4].mxu0 %vm424_vm0, %v1269_v41  ;;  %1152 = vmatmul.mubr.msk.bf16.vlgmr.msra.gmra.mrb[4].mxu1 %vm424_vm0, %v1269_v41 }
  0x38   :  { %601 = vmatpush1.bf16.msra.mxu0 %v1093_v13  ;;  %644 = vmatpush1.bf16.msra.mxu1 %v1095_v14 }
  0x39   :  { %602 = vmatprep.subr.bf16.mxu0 %v1110_v15  ;;  %645 = vmatprep.subr.bf16.mxu1 %v1112_v16 }
  0x3a   :  { %632 = vmatprep.mubr.bf16.mxu0 %v1220_v0  ;;  %675 = vmatprep.mubr.bf16.mxu1 %v1220_v0 }
  0x3c   :  { %603 = vmatpush1.bf16.msra.mxu0 %v1109_v21  ;;  %646 = vmatpush1.bf16.msra.mxu1 %v1111_v22 }
  0x3d   :  { %604 = vmatprep.subr.bf16.mxu0 %v1126_v23  ;;  %647 = vmatprep.subr.bf16.mxu1 %v1128_v24 }
  0x40   :  { %605 = vmatpush1.bf16.msra.mxu0 %v1125_v29  ;;  %648 = vmatpush1.bf16.msra.mxu1 %v1127_v30 }
  0x41   :  { %606 = vmatprep.subr.bf16.mxu0 %v1142_v31  ;;  %649 = vmatprep.subr.bf16.mxu1 %v1144_v32 }
  0x44   :  { %607 = vmatpush1.bf16.msra.mxu0 %v1141_v37  ;;  %650 = vmatpush1.bf16.msra.mxu1 %v1143_v38 }
  0x45   :  { %686 = vmatprep.subr.bf16.mxu0 %v1098_v39  ;;  %729 = vmatprep.subr.bf16.mxu1 %v1100_v40 }
  0x47   :  { %1153 = vmatmul.mubr.msk.bf16.vlgmr.msra.gmra.mrb[8].mxu0 %vm424_vm0, %v1269_v41  ;;  %1154 = vmatmul.mubr.msk.bf16.vlgmr.msra.gmra.mrb[8].mxu1 %vm424_vm0, %v1269_v41 }
  0x48   :  { %687 = vmatpush1.bf16.msra.mxu0 %v1097_v46  ;;  %730 = vmatpush1.bf16.msra.mxu1 %v1099_v47 }
  0x49   :  { %688 = vmatprep.subr.bf16.mxu0 %v1114_v48  ;;  %731 = vmatprep.subr.bf16.mxu1 %v1116_v49 }
  0x4a   :  { %718 = vmatprep.mubr.bf16.mxu0 %v1220_v0  ;;  %761 = vmatprep.mubr.bf16.mxu1 %v1220_v0 }
  0x4c   :  { %689 = vmatpush1.bf16.msra.mxu0 %v1113_v54  ;;  %732 = vmatpush1.bf16.msra.mxu1 %v1115_v55 }
  0x4d   :  { %690 = vmatprep.subr.bf16.mxu0 %v1130_v56  ;;  %733 = vmatprep.subr.bf16.mxu1 %v1132_v57 }
  0x50   :  { %691 = vmatpush1.bf16.msra.mxu0 %v1129_v62  ;;  %734 = vmatpush1.bf16.msra.mxu1 %v1131_v63 }
  0x51   :  { %692 = vmatprep.subr.bf16.mxu0 %v1146_v1  ;;  %735 = vmatprep.subr.bf16.mxu1 %v1148_v2 }
  0x54   :  { %693 = vmatpush1.bf16.msra.mxu0 %v1145_v3  ;;  %736 = vmatpush1.bf16.msra.mxu1 %v1147_v4 }
  0x57   :  { %1155 = vmatmul.mubr.msk.bf16.vlgmr.msra.gmra.mrb[12].mxu0 %vm424_vm0, %v1269_v41  ;;  %1156 = vmatmul.mubr.msk.bf16.vlgmr.msra.gmra.mrb[12].mxu1 %vm424_vm0, %v1269_v41 }
  0xfa   :  { %v1293_v0 = vpop.f32.mrb[0].mxu0  ;;  %v1297_v6 = vpop.f32.mrb[0].mxu1 }
  0xfb   :  { %v1295_v5 = vpop.f32.mrb[1].mxu0  ;;  %v1303_v9 = vpop.f32.mrb[1].mxu1 }
  0xfc   :  { %v772_v7 = vadd.f32 %v1295_v5, %v1293_v0  ;;  %v1301_v8 = vpop.f32.mrb[2].mxu0  ;;  %v1307_v11 = vpop.f32.mrb[2].mxu1 }
  0xfd   :  { %v1305_v10 = vpop.f32.mrb[3].mxu0  ;;  %v1312_v13 = vpop.f32.mrb[3].mxu1 }
  0xfe   :  { %v773_v12 = vadd.f32 %v772_v7, %v1297_v6  ;;  %v789_v41 = vadd.f32 %v1305_v10, %v1301_v8 }
 0x100   :  { %v774_v14 = vadd.f32 %v773_v12, %v1303_v9  ;;  %v790_v15 = vadd.f32 %v789_v41, %v1307_v11 }
 0x102   :  { %v791_v16 = vadd.f32 %v790_v15, %v1312_v13 }
 0x10a   :  { %v548_v17 = vpop.f32.mrb[4].mxu0  ;;  %v1319_v20 = vpop.f32.mrb[4].mxu1 }
 0x10b   :  { %v775_v18 = vadd.f32 %v774_v14, %v548_v17  ;;  %v1317_v19 = vpop.f32.mrb[5].mxu0  ;;  %v1323_v22 = vpop.f32.mrb[5].mxu1 }
 0x10c   :  { %v1321_v21 = vpop.f32.mrb[6].mxu0  ;;  %v1329_v26 = vpop.f32.mrb[6].mxu1 }
 0x10d   :  { %v776_v23 = vadd.f32 %v775_v18, %v1317_v19  ;;  %v792_v24 = vadd.f32 %v791_v16, %v1321_v21  ;;  %v1327_v25 = vpop.f32.mrb[7].mxu0  ;;  %v1331_v27 = vpop.f32.mrb[7].mxu1 }
 0x10f   :  { %v777_v28 = vadd.f32 %v776_v23, %v1319_v20  ;;  %v793_v29 = vadd.f32 %v792_v24, %v1327_v25 }
 0x111   :  { %v778_v30 = vadd.f32 %v777_v28, %v1323_v22  ;;  %v794_v31 = vadd.f32 %v793_v29, %v1329_v26 }
 0x113   :  { %v795_v32 = vadd.f32 %v794_v31, %v1331_v27 }
 0x11a   :  { %v634_v33 = vpop.f32.mrb[8].mxu0  ;;  %v1340_v36 = vpop.f32.mrb[8].mxu1 }
 0x11b   :  { %v779_v34 = vadd.f32 %v778_v30, %v634_v33  ;;  %v1338_v35 = vpop.f32.mrb[9].mxu0  ;;  %v1344_v38 = vpop.f32.mrb[9].mxu1 }
 0x11c   :  { %v1342_v37 = vpop.f32.mrb[10].mxu0  ;;  %v1350_v43 = vpop.f32.mrb[10].mxu1 }
 0x11d   :  { %v780_v39 = vadd.f32 %v779_v34, %v1338_v35  ;;  %v796_v40 = vadd.f32 %v795_v32, %v1342_v37  ;;  %v1348_v42 = vpop.f32.mrb[11].mxu0  ;;  %v1352_v44 = vpop.f32.mrb[11].mxu1 }
 0x11f   :  { %v781_v45 = vadd.f32 %v780_v39, %v1340_v36  ;;  %v797_v46 = vadd.f32 %v796_v40, %v1348_v42 }
 0x121   :  { %v782_v47 = vadd.f32 %v781_v45, %v1344_v38  ;;  %v798_v48 = vadd.f32 %v797_v46, %v1350_v43 }
 0x123   :  { %v799_v49 = vadd.f32 %v798_v48, %v1352_v44 }
 0x12a   :  { %v1359_v50 = vpop.f32.mrb[12].mxu0  ;;  %v1364_v53 = vpop.f32.mrb[12].mxu1 }
 0x12b   :  { %v783_v51 = vadd.f32 %v782_v47, %v1359_v50  ;;  %v1362_v52 = vpop.f32.mrb[13].mxu0  ;;  %v1368_v55 = vpop.f32.mrb[13].mxu1 }
 0x12c   :  { %v1366_v54 = vpop.f32.mrb[14].mxu0  ;;  %v1374_v59 = vpop.f32.mrb[14].mxu1 }
 0x12d   :  { %v784_v56 = vadd.f32 %v783_v51, %v1362_v52  ;;  %v800_v57 = vadd.f32 %v799_v49, %v1366_v54  ;;  %v1372_v58 = vpop.f32.mrb[15].mxu0  ;;  %v1376_v60 = vpop.f32.mrb[15].mxu1 }
 0x12f   :  { %v785_v61 = vadd.f32 %v784_v56, %v1364_v53  ;;  %v801_v62 = vadd.f32 %v800_v57, %v1372_v58 }
 0x131   :  { %v802_v63 = vadd.f32 %v801_v62, %v1374_v59  ;;  %v786_v1 = vadd.f32 %v785_v61, %v1368_v55 }
 0x133   :  { %v803_v2 = vadd.f32 %v802_v63, %v1376_v60  ;;  %787 = vadd.xlane.f32.xlu0 %v786_v1 }
 0x137   :  { %804 = vadd.xlane.f32.xlu0 %v803_v2 }
 0x1c0   :  { %v788_v3 = vpop.xlane.xlu0 %787 }
 0x1c1   :  { %v1383_v4 = vmul.f32 0.00048828125, %v788_v3 }
 0x1c3   :  { %v1387_v7 = vsub.f32 %v1293_v0, %v1383_v4  ;;  %v1391_v12 = vsub.f32 %v1295_v5, %v1383_v4  ;;  %v1395_v14 = vsub.f32 %v1297_v6, %v1383_v4  ;;  %v1405_v0 = vsub.f32 %v1303_v9, %v1383_v4 }
 0x1c4   :  { %v805_v41 = vpop.xlane.xlu0 %804  ;;  %v1408_v5 = vsub.f32 %v548_v17, %v1383_v4  ;;  %v1422_v29 = vsub.f32 %v1317_v19, %v1383_v4  ;;  %v1428_v30 = vsub.f32 %v1319_v20, %v1383_v4  ;;  %v1442_v34 = vsub.f32 %v1323_v22, %v1383_v4 }
 0x1c5   :  { %v840_v15 = vmul.f32 %v1387_v7, %v1387_v7  ;;  %v841_v16 = vmul.f32 %v1391_v12, %v1391_v12  ;;  %v1401_v18 = vmul.f32 0.00048828125, %v805_v41  ;;  %v842_v23 = vmul.f32 %v1395_v14, %v1395_v14 }
 0x1c6   :  { %v843_v9 = vmul.f32 %v1405_v0, %v1405_v0  ;;  %v845_v20 = vmul.f32 %v1422_v29, %v1422_v29  ;;  %v846_v45 = vmul.f32 %v1428_v30, %v1428_v30  ;;  %v1463_v49 = vsub.f32 %v1338_v35, %v1383_v4 }
 0x1c7   :  { %v872_v6 = vadd.f32 %v841_v16, %v840_v15  ;;  %v1414_v24 = vsub.f32 %v1301_v8, %v1401_v18  ;;  %v1418_v28 = vsub.f32 %v1305_v10, %v1401_v18  ;;  %v844_v8 = vmul.f32 %v1408_v5, %v1408_v5 }
 0x1c8   :  { %v1434_v10 = vsub.f32 %v1307_v11, %v1401_v18  ;;  %v1448_v40 = vsub.f32 %v1312_v13, %v1401_v18  ;;  %v1451_v11 = vsub.f32 %v634_v33, %v1383_v4  ;;  %v1457_v47 = vsub.f32 %v1321_v21, %v1401_v18 }
 0x1c9   :  { %v873_v17 = vadd.f32 %v872_v6, %v842_v23  ;;  %v856_v19 = vmul.f32 %v1414_v24, %v1414_v24  ;;  %v857_v32 = vmul.f32 %v1418_v28, %v1418_v28  ;;  %v847_v13 = vmul.f32 %v1442_v34, %v1442_v34 }
 0x1ca   :  { %v858_v22 = vmul.f32 %v1434_v10, %v1434_v10  ;;  %v1469_v51 = vsub.f32 %v1327_v25, %v1401_v18  ;;  %v859_v21 = vmul.f32 %v1448_v40, %v1448_v40  ;;  %v1475_v57 = vsub.f32 %v1340_v36, %v1383_v4 }
 0x1cb   :  { %v874_v31 = vadd.f32 %v873_v17, %v843_v9  ;;  %v889_v48 = vadd.f32 %v857_v32, %v856_v19  ;;  %v848_v35 = vmul.f32 %v1451_v11, %v1451_v11  ;;  %v1481_v62 = vsub.f32 %v1329_v26, %v1401_v18 }
 0x1cc   :  { %v860_v25 = vmul.f32 %v1457_v47, %v1457_v47  ;;  %v1487_v1 = vsub.f32 %v1344_v38, %v1383_v4  ;;  %v849_v36 = vmul.f32 %v1463_v49, %v1463_v49  ;;  %v1493_v3 = vsub.f32 %v1331_v27, %v1401_v18 }
 0x1cd   :  { %v875_v39 = vadd.f32 %v874_v31, %v844_v8  ;;  %v890_v56 = vadd.f32 %v889_v48, %v858_v22  ;;  %v861_v26 = vmul.f32 %v1469_v51, %v1469_v51  ;;  %v1499_v15 = vsub.f32 %v1359_v50, %v1383_v4 }
 0x1ce   :  { %v850_v38 = vmul.f32 %v1475_v57, %v1475_v57  ;;  %v1505_v23 = vsub.f32 %v1342_v37, %v1401_v18  ;;  %v862_v27 = vmul.f32 %v1481_v62, %v1481_v62  ;;  %v1511_v9 = vsub.f32 %v1362_v52, %v1383_v4 }
 0x1cf   :  { %v876_v46 = vadd.f32 %v875_v39, %v845_v20  ;;  %v891_v63 = vadd.f32 %v890_v56, %v859_v21  ;;  %v851_v50 = vmul.f32 %v1487_v1, %v1487_v1  ;;  %v1517_v8 = vsub.f32 %v1348_v42, %v1401_v18 }
 0x1d0   :  { %v863_v37 = vmul.f32 %v1493_v3, %v1493_v3  ;;  %v1523_v19 = vsub.f32 %v1364_v53, %v1383_v4  ;;  %v852_v52 = vmul.f32 %v1499_v15, %v1499_v15  ;;  %v1529_v20 = vsub.f32 %v1350_v43, %v1401_v18 }
 0x1d1   :  { %v877_v33 = vadd.f32 %v876_v46, %v846_v45  ;;  %v892_v41 = vadd.f32 %v891_v63, %v860_v25  ;;  %v864_v42 = vmul.f32 %v1505_v23, %v1505_v23  ;;  %v1535_v45 = vsub.f32 %v1368_v55, %v1383_v4 }
 0x1d2   :  { %v853_v53 = vmul.f32 %v1511_v9, %v1511_v9  ;;  %v1541_v22 = vsub.f32 %v1352_v44, %v1401_v18  ;;  %v865_v43 = vmul.f32 %v1517_v8, %v1517_v8  ;;  %v1549_v55 = vsub.f32 %v1366_v54, %v1401_v18 }
 0x1d3   :  { %v878_v61 = vadd.f32 %v877_v33, %v847_v13  ;;  %v893_v6 = vadd.f32 %v892_v41, %v861_v26  ;;  %v854_v13 = vmul.f32 %v1523_v19, %v1523_v19  ;;  %v866_v4 = vmul.f32 %v1529_v20, %v1529_v20 }
 0x1d4   :  { %v855_v44 = vmul.f32 %v1535_v45, %v1535_v45  ;;  %v1563_v54 = vsub.f32 %v1374_v59, %v1401_v18  ;;  %v1569_v26 = vsub.f32 %v1376_v60, %v1401_v18 }
 0x1d5   :  { %v879_v2 = vadd.f32 %v878_v61, %v848_v35  ;;  %v894_v31 = vadd.f32 %v893_v6, %v862_v27  ;;  %v1557_v35 = vsub.f32 %v1372_v58, %v1401_v18  ;;  %v867_v61 = vmul.f32 %v1541_v22, %v1541_v22 }
 0x1d6   :  { %v871_v59 = vmul.f32 %v1569_v26, %v1569_v26 }
 0x1d7   :  { %v880_v16 = vadd.f32 %v879_v2, %v849_v36  ;;  %v895_v39 = vadd.f32 %v894_v31, %v863_v37  ;;  %v868_v36 = vmul.f32 %v1549_v55, %v1549_v55  ;;  %v869_v58 = vmul.f32 %v1557_v35, %v1557_v35 }
 0x1d9   :  { %v881_v17 = vadd.f32 %v880_v16, %v850_v38  ;;  %v896_v48 = vadd.f32 %v895_v39, %v864_v42  ;;  %v870_v38 = vmul.f32 %v1563_v54, %v1563_v54 }
 0x1db   :  { %v882_v32 = vadd.f32 %v881_v17, %v851_v50  ;;  %v897_v21 = vadd.f32 %v896_v48, %v865_v43  ;;  %v958_v50 = vld [vmem:[%s1639_s3] sm:$0xff]  ;;  %v959_v48 = vld [vmem:[%s1639_s3 + $0x8] sm:$0xff] }
 0x1dd   :  { %v883_v46 = vadd.f32 %v882_v32, %v852_v52  ;;  %v898_v25 = vadd.f32 %v897_v21, %v866_v4  ;;  %v908_v32 = vld [vmem:[%s1638_s2] sm:$0xff] }
 0x1df   :  { %v884_v33 = vadd.f32 %v883_v46, %v853_v53  ;;  %v899_v2 = vadd.f32 %v898_v25, %v867_v61  ;;  %v909_v53 = vld [vmem:[%s1638_s2 + $0x8] sm:$0xff]  ;;  %s1221_s2 = smov [#allocation5]  }
 0x1e0   :  { %s1072_s3 = sshll.u32 %s1221_s2, 4  ;;  %s1073_s3 = int_to_ptr.vmem [resolvable:$true] %s1072_s3 }
 0x1e1   :  { %v885_v56 = vadd.f32 %v884_v33, %v854_v13  ;;  %v900_v41 = vadd.f32 %v899_v2, %v868_v36  ;;  %s1191_s11 = scalar_lea.vmem %s1073_s3, 4096  ;;  %p1196_p9 = scmp.lt.s32.totalorder %s1073_s3, %s1073_s3 }
 0x1e2   :  { %p1192_p8 = scmp.ne.s32.totalorder %s1073_s3, %s1191_s11  ;;  %p1197_p10 = scmp.lt.s32.totalorder %s1191_s11, %s1191_s11 }
 0x1e3   :  { %v886_v63 = vadd.f32 %v885_v56, %v855_v44  ;;  %v901_v16 = vadd.f32 %v900_v41, %v869_v58 }
 0x1e4   :  { %p1198_p11 = por %p1197_p10, %p1196_p9 }
 0x1e5   :  { %887 = vadd.xlane.f32.xlu1 %v886_v63  ;;  %v902_v27 = vadd.f32 %v901_v16, %v870_v38 }
 0x1e6   :  { %p1199_p12 = pnand %p1198_p11, %p1192_p8 }
 0x1e7   :  { %v903_v6 = vadd.f32 %v902_v27, %v871_v59 }
 0x1e9   :  { %904 = vadd.xlane.f32.xlu1 %v903_v6 }
 0x1fa   :  { %962 = vperm.xlu1 %1163, %v958_v50  }
 0x272   :  { %v888_v60 = vpop.xlane.xlu1 %887 }
 0x273   :  { %v906_v18 = vmul.f32 0.00048828125, %v888_v60 }
 0x275   :  { %v910_v17 = vadd.f32 1e-05, %v906_v18 }
 0x276   :  { %v905_v37 = vpop.xlane.xlu1 %904 }
 0x277   :  { %1165 = vrsqrt.f32 %v910_v17  ;;  %v907_v31 = vmul.f32 0.00048828125, %v905_v37 }
 0x279   :  { %v911_v52 = vadd.f32 1e-05, %v907_v31 }
 0x27a   :  { %v963_v36 = vpop.permute.xlu1 %962 }
 0x27b   :  { %1167 = vrsqrt.f32 %v911_v52 }
 0x281   :  { %v1166_v42 = vpop.eup %1165 }
 0x282   :  { %v914_v39 = vmul.f32 %v1166_v42, %v908_v32 }
 0x284   :  { %918 = vperm.xlu0 %1162, %v914_v39  }
 0x285   :  { %v1168_v46 = vpop.eup %1167 }
 0x286   :  { %v915_v43 = vmul.f32 %v1168_v46, %v909_v53 }
 0x288   :  { %923 = vperm.xlu1 %1163, %v915_v43  }
 0x28c   :  { %967 = vperm.xlu1 %1163, %v959_v48  }
 0x303   :  { %v919_v13 = vpop.permute.xlu0 %918 }
 0x304   :  { %v926_v33 = vmul.f32 %v919_v13, %v1387_v7  ;;  %v927_v4 = vmul.f32 %v919_v13, %v1391_v12  ;;  %v928_v21 = vmul.f32 %v919_v13, %v1395_v14  ;;  %v929_v44 = vmul.f32 %v919_v13, %v1405_v0 }
 0x305   :  { %v930_v56 = vmul.f32 %v919_v13, %v1408_v5  ;;  %v931_v61 = vmul.f32 %v919_v13, %v1422_v29  ;;  %v932_v25 = vmul.f32 %v919_v13, %v1428_v30  ;;  %v933_v63 = vmul.f32 %v919_v13, %v1442_v34 }
 0x306   :  { %v934_v2 = vmul.f32 %v919_v13, %v1451_v11  ;;  %v935_v58 = vmul.f32 %v919_v13, %v1463_v49  ;;  %v936_v7 = vmul.f32 %v919_v13, %v1475_v57  ;;  %v937_v12 = vmul.f32 %v919_v13, %v1487_v1 }
 0x307   :  { %v938_v14 = vmul.f32 %v919_v13, %v1499_v15  ;;  %v939_v0 = vmul.f32 %v919_v13, %v1511_v9  ;;  %v940_v5 = vmul.f32 %v919_v13, %v1523_v19  ;;  %v941_v29 = vmul.f32 %v919_v13, %v1535_v45  ;;  %v924_v37 = vpop.permute.xlu1 %923 }
 0x308   :  { %v970_v30 = vadd.f32 %v963_v36, %v926_v33  ;;  %v971_v41 = vadd.f32 %v963_v36, %v927_v4  ;;  %v972_v34 = vadd.f32 %v963_v36, %v928_v21  ;;  %v973_v38 = vadd.f32 %v963_v36, %v929_v44 }
 0x309   :  { %v974_v16 = vadd.f32 %v963_v36, %v930_v56  ;;  %v975_v11 = vadd.f32 %v963_v36, %v931_v61  ;;  %v976_v59 = vadd.f32 %v963_v36, %v932_v25  ;;  %v977_v49 = vadd.f32 %v963_v36, %v933_v63 }
 0x30a   :  { %v978_v27 = vadd.f32 %v963_v36, %v934_v2  ;;  %v979_v57 = vadd.f32 %v963_v36, %v935_v58  ;;  %v980_v6 = vadd.f32 %v963_v36, %v936_v7  ;;  %v981_v1 = vadd.f32 %v963_v36, %v937_v12 }
 0x30b   :  { %v982_v50 = vadd.f32 %v963_v36, %v938_v14  ;;  %v983_v15 = vadd.f32 %v963_v36, %v939_v0  ;;  %v984_v60 = vadd.f32 %v963_v36, %v940_v5  ;;  %v985_v9 = vadd.f32 %v963_v36, %v941_v29  ;;  %v968_v58 = vpop.permute.xlu1 %967 }
 0x30c   :  { %v1002_v18 = vmax.f32 %v970_v30, 0.0  ;;  %v1003_v19 = vmax.f32 %v971_v41, 0.0  ;;  %v1004_v17 = vmax.f32 %v972_v34, 0.0  ;;  %v1005_v45 = vmax.f32 %v973_v38, 0.0 }
 0x30d   :  { %v1006_v31 = vmax.f32 %v974_v16, 0.0  ;;  %v1007_v52 = vmax.f32 %v975_v11, 0.0  ;;  %v1008_v32 = vmax.f32 %v976_v59, 0.0  ;;  %v1009_v42 = vmax.f32 %v977_v49, 0.0 }
 0x30e   :  { %v1010_v39 = vmax.f32 %v978_v27, 0.0  ;;  %v1011_v53 = vmax.f32 %v979_v57, 0.0  ;;  %v1012_v46 = vmax.f32 %v980_v6, 0.0  ;;  %v1013_v43 = vmax.f32 %v981_v1, 0.0  ;;  %1034 = vst [vmem:[#allocation5] sm:$0xff] %v1002_v18  ;;  %1035 = vst [vmem:[#allocation5 + $0x8] sm:$0xff] %v1003_v19 }
 0x30f   :  { %1036 = vst [vmem:[#allocation5 + $0x10] sm:$0xff] %v1004_v17  ;;  %1037 = vst [vmem:[#allocation5 + $0x18] sm:$0xff] %v1005_v45  ;;  %v1014_v48 = vmax.f32 %v982_v50, 0.0  ;;  %v1015_v13 = vmax.f32 %v983_v15, 0.0  ;;  %v1016_v33 = vmax.f32 %v984_v60, 0.0  ;;  %v1017_v4 = vmax.f32 %v985_v9, 0.0 }
 0x310   :  { %1038 = vst [vmem:[#allocation5 + $0x20] sm:$0xff] %v1006_v31  ;;  %1039 = vst [vmem:[#allocation5 + $0x28] sm:$0xff] %v1007_v52  ;;  %v942_v21 = vmul.f32 %v924_v37, %v1414_v24  ;;  %v943_v44 = vmul.f32 %v924_v37, %v1418_v28  ;;  %v944_v56 = vmul.f32 %v924_v37, %v1434_v10 }
 0x311   :  { %1040 = vst [vmem:[#allocation5 + $0x30] sm:$0xff] %v1008_v32  ;;  %1041 = vst [vmem:[#allocation5 + $0x38] sm:$0xff] %v1009_v42  ;;  %v945_v61 = vmul.f32 %v924_v37, %v1448_v40  ;;  %v946_v25 = vmul.f32 %v924_v37, %v1457_v47  ;;  %v947_v63 = vmul.f32 %v924_v37, %v1469_v51 }
 0x312   :  { %1051 = vst [vmem:[#allocation5 + $0x80] sm:$0xff] %v1010_v39  ;;  %1052 = vst [vmem:[#allocation5 + $0x88] sm:$0xff] %v1011_v53  ;;  %v948_v36 = vmul.f32 %v924_v37, %v1481_v62  ;;  %v949_v2 = vmul.f32 %v924_v37, %v1493_v3  ;;  %v950_v24 = vmul.f32 %v924_v37, %v1505_v23 }
 0x313   :  { %1053 = vst [vmem:[#allocation5 + $0x90] sm:$0xff] %v1012_v46  ;;  %1054 = vst [vmem:[#allocation5 + $0x98] sm:$0xff] %v1013_v43  ;;  %v951_v28 = vmul.f32 %v924_v37, %v1517_v8  ;;  %v952_v10 = vmul.f32 %v924_v37, %v1529_v20  ;;  %v953_v40 = vmul.f32 %v924_v37, %v1541_v22 }
 0x314   :  { %1055 = vst [vmem:[#allocation5 + $0xa0] sm:$0xff] %v1014_v48  ;;  %1056 = vst [vmem:[#allocation5 + $0xa8] sm:$0xff] %v1015_v13  ;;  %v954_v7 = vmul.f32 %v924_v37, %v1549_v55  ;;  %v955_v12 = vmul.f32 %v924_v37, %v1557_v35  ;;  %v956_v47 = vmul.f32 %v924_v37, %v1563_v54 }
 0x315   :  { %1057 = vst [vmem:[#allocation5 + $0xb0] sm:$0xff] %v1016_v33  ;;  %1058 = vst [vmem:[#allocation5 + $0xb8] sm:$0xff] %v1017_v4  ;;  %v957_v51 = vmul.f32 %v924_v37, %v1569_v26  ;;  %v986_v62 = vadd.f32 %v968_v58, %v942_v21  ;;  %v987_v14 = vadd.f32 %v968_v58, %v943_v44 }
 0x316   :  { %v988_v3 = vadd.f32 %v968_v58, %v944_v56  ;;  %v989_v0 = vadd.f32 %v968_v58, %v945_v61  ;;  %v990_v5 = vadd.f32 %v968_v58, %v946_v25  ;;  %v991_v23 = vadd.f32 %v968_v58, %v947_v63 }
 0x317   :  { %v992_v29 = vadd.f32 %v968_v58, %v948_v36  ;;  %v993_v8 = vadd.f32 %v968_v58, %v949_v2  ;;  %v994_v30 = vadd.f32 %v968_v58, %v950_v24  ;;  %v995_v20 = vadd.f32 %v968_v58, %v951_v28 }
 0x318   :  { %v996_v41 = vadd.f32 %v968_v58, %v952_v10  ;;  %v997_v22 = vadd.f32 %v968_v58, %v953_v40  ;;  %v998_v34 = vadd.f32 %v968_v58, %v954_v7  ;;  %v999_v55 = vadd.f32 %v968_v58, %v955_v12 }
 0x319   :  { %v1000_v38 = vadd.f32 %v968_v58, %v956_v47  ;;  %v1001_v35 = vadd.f32 %v968_v58, %v957_v51  ;;  %v1018_v16 = vmax.f32 %v986_v62, 0.0  ;;  %v1019_v54 = vmax.f32 %v987_v14, 0.0 }
 0x31a   :  { %v1020_v11 = vmax.f32 %v988_v3, 0.0  ;;  %v1021_v26 = vmax.f32 %v989_v0, 0.0  ;;  %v1022_v59 = vmax.f32 %v990_v5, 0.0  ;;  %v1023_v49 = vmax.f32 %v991_v23, 0.0 }
 0x31b   :  { %v1024_v27 = vmax.f32 %v992_v29, 0.0  ;;  %v1025_v57 = vmax.f32 %v993_v8, 0.0  ;;  %v1026_v6 = vmax.f32 %v994_v30, 0.0  ;;  %v1027_v1 = vmax.f32 %v995_v20, 0.0  ;;  %1042 = vst [vmem:[#allocation5 + $0x40] sm:$0xff] %v1018_v16  ;;  %1043 = vst [vmem:[#allocation5 + $0x48] sm:$0xff] %v1019_v54 }
 0x31c   :  { %v1028_v50 = vmax.f32 %v996_v41, 0.0  ;;  %v1029_v15 = vmax.f32 %v997_v22, 0.0  ;;  %1044 = vst [vmem:[#allocation5 + $0x50] sm:$0xff] %v1020_v11  ;;  %1045 = vst [vmem:[#allocation5 + $0x58] sm:$0xff] %v1021_v26  ;;  %v1030_v60 = vmax.f32 %v998_v34, 0.0  ;;  %v1031_v9 = vmax.f32 %v999_v55, 0.0 }
 0x31d   :  { %v1032_v18 = vmax.f32 %v1000_v38, 0.0  ;;  %v1033_v19 = vmax.f32 %v1001_v35, 0.0  ;;  %1046 = vst [vmem:[#allocation5 + $0x60] sm:$0xff] %v1022_v59  ;;  %1047 = vst [vmem:[#allocation5 + $0x68] sm:$0xff] %v1023_v49 }
 0x31e   :  { %1048 = vst [vmem:[#allocation5 + $0x70] sm:$0xff] %v1024_v27  ;;  %1049 = vst [vmem:[#allocation5 + $0x78] sm:$0xff] %v1025_v57 }
 0x31f   :  { %1059 = vst [vmem:[#allocation5 + $0xc0] sm:$0xff] %v1026_v6  ;;  %1060 = vst [vmem:[#allocation5 + $0xc8] sm:$0xff] %v1027_v1 }
 0x320   :  { %1061 = vst [vmem:[#allocation5 + $0xd0] sm:$0xff] %v1028_v50  ;;  %1062 = vst [vmem:[#allocation5 + $0xd8] sm:$0xff] %v1029_v15 }
 0x321   :  { %1063 = vst [vmem:[#allocation5 + $0xe0] sm:$0xff] %v1030_v60  ;;  %1064 = vst [vmem:[#allocation5 + $0xe8] sm:$0xff] %v1031_v9 }
 0x322   :  { %1065 = vst [vmem:[#allocation5 + $0xf0] sm:$0xff] %v1032_v18  ;;  %1066 = vst [vmem:[#allocation5 + $0xf8] sm:$0xff] %v1033_v19 }
 0x323   :  { %1202 = shalt.err (!%p1199_p12)
}
 0x324   :  { %s1203_s14 = scalar_lea.hbm %s1640_s4, 4096 }
 0x325   :  { %p1204_p13 = scmp.ne.s32.totalorder %s1640_s4, %s1203_s14  ;;  %p1207_p0 = scmp.lt.u32.totalorder %s1203_s14, %s1640_s4 }
 0x327   :  { %p1209_p1 = pnand %p1207_p0, %p1204_p13 }
 0x329   :  { %1212 = shalt.err (!%p1209_p1)
}
 0x32a   :  { %1078 = dma.vmem_to_hbm [thread:$0]  %s1073_s3, 4096, %s1640_s4, [#allocation4], %s1218_s25, %s1218_s25, %s1219_s26  }
 0x32b   :  { %1215 = dma.done.wait [#allocation4], 4096  }
 0x32c   :  { %1216 = vsyncadd [#allocation4], 4294963200 }
 0x32d   :  { %1082 = vsyncpa [#allocation3], 1 }
 0x32e   :  { %1083 = vsyncpa [#allocation4], 1 }

</bundles_post_ra>
